<compile_context>
chip_gen: v6e
topology: v6e:2x2x1
jax: 0.10.0
libtpu: 0.0.40
codegen_flags: <defaults>
</compile_context>

<pallas_src>
import math
from functools import partial

import jax
import jax.numpy as jnp
from jax.experimental import pallas as pl
from jax.experimental.pallas import tpu as pltpu

ALPHA = 0.2          # LeakyReLU negative slope
NEG_INF = -9.0e15    # masking constant used by the PyTorch module
KSIZE = 5            # residual Conv1d kernel size (padding = 2)
LANE = 128


def _gat_fused_kernel(xpad_ref, adj_ref, w_ref, a1_ref, a2_ref, cw_ref, cb_ref,
                      out_ref, *, n_heads, f_out, n_nodes, tq, hf, hf_pad):
    """One (batch element, query tile) grid step; all heads fused.

    xpad_ref : (1, N+4, Fin)  zero-padded node features (resident per batch elem)
    adj_ref  : (1, tq, N)     adjacency rows for this query tile (caller dtype)
    w_ref    : (Fin, HFp)     fused per-head projection weights (lane-dense)
    a1_ref   : (HFp, H)       block-diagonal a[:Fout]  (one column per head)
    a2_ref   : (HFp, H)       block-diagonal a[Fout:]
    cw_ref   : (5, Fin, HFp)  fused residual-conv taps
    cb_ref   : (1, HFp)       fused residual-conv bias
    out_ref  : (1, tq, HFp)
    """
    qoff = pl.program_id(1) * tq
    if tq % 8 == 0:
        qoff = pl.multiple_of(qoff, 8)

    w_all = w_ref[...]                                      # (Fin, HFp)
    mask = adj_ref[0] > 0                                   # (tq, N), hoisted once

    # ---- key-side projection for the whole graph (needed by every tile) ----
    x_full = xpad_ref[0, pl.ds(2, n_nodes), :]              # centre taps == x
    wh_full = jnp.dot(x_full, w_all, preferred_element_type=jnp.float32)   # (N, HFp)
    wh_b = wh_full.astype(jnp.bfloat16)                     # bf16 copy for MXU
    # a2-logits for all heads in one MXU pass, already (H, N) row layout —
    # no per-head lane reduce / vector transpose on the XLU.
    s2_rows = jax.lax.dot_general(a2_ref[...], wh_full,
                                  (((0,), (1,)), ((), ())),
                                  preferred_element_type=jnp.float32)      # (H, N)

    # ---- query-side projection for this tile --------------------------------
    x_q = xpad_ref[0, pl.ds(qoff + 2, tq), :]               # (tq, Fin)
    wh_q = jnp.dot(x_q, w_all, preferred_element_type=jnp.float32)
    s1_q = jnp.dot(wh_q, a1_ref[...], preferred_element_type=jnp.float32)  # (tq, H)

    # ---- residual Conv1d(k=5, pad=2): 5 shifted-slice matmuls (no im2col) ----
    res = cb_ref[...]                                       # (1, HFp), broadcasts up
    for k in range(KSIZE):
        xk = xpad_ref[0, pl.ds(qoff + k, tq), :]
        res = res + jnp.dot(xk, cw_ref[k], preferred_element_type=jnp.float32)

    # ---- per-head attention, ELU, residual add, direct store ----------------
    for h in range(n_heads):                                # static unroll
        lo, hi = h * f_out, (h + 1) * f_out
        e = s1_q[:, h:h + 1] + s2_rows[h:h + 1, :]          # (tq, N)
        e = jnp.where(e > 0, e, ALPHA * e)                  # LeakyReLU
        e = jnp.where(mask, e, NEG_INF)                     # adjacency mask
        m = jnp.max(e, axis=-1, keepdims=True)
        p = jnp.exp(e - m)
        inv_l = pl.reciprocal(jnp.sum(p, axis=-1, keepdims=True), approx=True)
        # dominant-FLOP matmul in bf16; softmax normalisation applied after.
        hp = jnp.dot(p.astype(jnp.bfloat16), wh_b[:, lo:hi],
                     preferred_element_type=jnp.float32) * inv_l           # (tq, Fout)
        # ELU (concat=True).  Clamp so the discarded branch never overflows.
        neg = jnp.exp(jnp.minimum(hp, 0.0)) - 1.0
        out_ref[0, :, lo:hi] = jnp.where(hp > 0, hp, neg) + res[:, lo:hi]

    if hf_pad > hf:                                         # keep padded lanes defined
        out_ref[0, :, hf:] = jnp.zeros((tq, hf_pad - hf), jnp.float32)


def _pick_query_tile(n):
    """Largest multiple-of-8 divisor of n that is <= 256 (else the whole axis)."""
    if n % 8 != 0:
        return n
    for c in range(min(n, 256), 0, -8):
        if n % c == 0:
            return c
    return n


def _vmem_limit_bytes():
    # Raise the default scoped-VMEM limit (16/32 MiB) while leaving headroom
    # below physical capacity (64 MiB on v7x, 128 MiB on v5e/v6e).
    try:
        cap = int(pltpu.get_tpu_info().vmem_capacity_bytes)
        return max(32 << 20, min(cap - (16 << 20), 100 << 20))
    except Exception:
        return 48 << 20


def gat_multihead_forward(x, adj, params):
    """x: (B, N, Fin) f32; adj: (B, N, N) any numeric dtype (only `adj > 0` used)."""
    w, a1, a2, cw, cb = (params["w"], params["a1"], params["a2"],
                         params["cw"], params["cb"])
    B, N, Fin = x.shape
    H, _, Fout = w.shape
    HF = H * Fout
    HFp = ((HF + LANE - 1) // LANE) * LANE          # lane-dense fused column count
    pad = HFp - HF

    # ---- fuse per-head parameters into lane-dense (..., HFp) layouts (tiny) ----
    w_all = jnp.transpose(w, (1, 0, 2)).reshape(Fin, HF)                   # (Fin, HF)
    cw_all = jnp.transpose(cw, (1, 2, 0, 3)).reshape(KSIZE, Fin, HF)       # (5, Fin, HF)
    cb_all = cb.reshape(1, HF)                                             # (1, HF)
    eye = jnp.eye(H, dtype=a1.dtype)
    a1_bd = (a1[:, :, 0][:, :, None] * eye[:, None, :]).reshape(HF, H)     # block-diag
    a2_bd = (a2[:, :, 0][:, :, None] * eye[:, None, :]).reshape(HF, H)
    if pad:
        w_all = jnp.pad(w_all, ((0, 0), (0, pad)))
        cw_all = jnp.pad(cw_all, ((0, 0), (0, 0), (0, pad)))
        cb_all = jnp.pad(cb_all, ((0, 0), (0, pad)))
        a1_bd = jnp.pad(a1_bd, ((0, pad), (0, 0)))
        a2_bd = jnp.pad(a2_bd, ((0, pad), (0, 0)))

    # Only per-call input prep: zero-pad the node axis for the k=5 residual conv.
    xpad = jnp.pad(x, ((0, 0), (2, 2), (0, 0)))

    tq = _pick_query_tile(N)
    n_qt = N // tq

    kernel = partial(_gat_fused_kernel, n_heads=H, f_out=Fout, n_nodes=N,
                     tq=tq, hf=HF, hf_pad=HFp)

    out = pl.pallas_call(
        kernel,
        out_shape=jax.ShapeDtypeStruct((B, N, HFp), jnp.float32),
        grid_spec=pltpu.PrefetchScalarGridSpec(
            num_scalar_prefetch=0,
            grid=(B, n_qt),
            in_specs=[
                pl.BlockSpec((1, N + 4, Fin), lambda b, q: (b, 0, 0)),    # padded x
                pl.BlockSpec((1, tq, N), lambda b, q: (b, q, 0)),         # adj rows
                pl.BlockSpec((Fin, HFp), lambda b, q: (0, 0)),            # fused W
                pl.BlockSpec((HFp, H), lambda b, q: (0, 0)),              # a[:Fout] bd
                pl.BlockSpec((HFp, H), lambda b, q: (0, 0)),              # a[Fout:] bd
                pl.BlockSpec((KSIZE, Fin, HFp), lambda b, q: (0, 0, 0)),  # conv W taps
                pl.BlockSpec((1, HFp), lambda b, q: (0, 0)),              # conv bias
            ],
            out_specs=pl.BlockSpec((1, tq, HFp), lambda b, q: (b, q, 0)),
        ),
        compiler_params=pltpu.CompilerParams(
            dimension_semantics=("parallel", "parallel"),
            vmem_limit_bytes=_vmem_limit_bytes()),
    )(xpad, adj, w_all, a1_bd, a2_bd, cw_all, cb_all)

    return out[..., :HF] if pad else out                    # (B, N, H*Fout)


def reference_forward(x, adj, params):
    """Pure-JAX reference mirroring the PyTorch forward (eval mode)."""
    w, a1, a2, cw, cb = (params["w"], params["a1"], params["a2"],
                         params["cw"], params["cb"])
    H = w.shape[0]
    outs = []
    for h in range(H):
        wh = x @ w[h]
        e = wh @ a1[h] + jnp.swapaxes(wh @ a2[h], 1, 2)
        e = jnp.where(e > 0, e, ALPHA * e)
        att = jnp.where(adj > 0, e, NEG_INF)
        att = jax.nn.softmax(att, axis=-1)
        hp = att @ wh
        out = jnp.where(hp > 0, hp, jnp.exp(jnp.minimum(hp, 0.0)) - 1.0)
        cw_t = jnp.transpose(cw[h], (2, 1, 0))              # (Fout, Fin, 5) torch layout
        res = jax.lax.conv_general_dilated(
            jnp.swapaxes(x, 1, 2), cw_t, window_strides=(1,), padding=((2, 2),),
            dimension_numbers=("NCH", "OIH", "NCH"))
        res = jnp.swapaxes(res, 1, 2) + cb[h]
        outs.append(out + res)
    return jnp.concatenate(outs, axis=-1)


if __name__ == "__main__":
    B, N, Fin, Fout, H = 2, 8, 16, 32, 2

    key = jax.random.PRNGKey(0)
    kx, kadj, kw, ka, kcw, kcb = jax.random.split(key, 6)

    x = jax.random.normal(kx, (B, N, Fin), dtype=jnp.float32)
    adj = (jax.random.uniform(kadj, (B, N, N)) > 0.4).astype(jnp.float32)

    # deterministic parameter init (xavier-style bounds, Conv1d kaiming-style bounds)
    gain = math.sqrt(2.0)
    bw = gain * math.sqrt(6.0 / (Fin + Fout))
    w = jax.random.uniform(kw, (H, Fin, Fout), minval=-bw, maxval=bw, dtype=jnp.float32)
    ba = gain * math.sqrt(6.0 / (2 * Fout + 1))
    a = jax.random.uniform(ka, (H, 2 * Fout, 1), minval=-ba, maxval=ba, dtype=jnp.float32)
    a1, a2 = a[:, :Fout, :], a[:, Fout:, :]
    bc = 1.0 / math.sqrt(Fin * KSIZE)
    cw_torch = jax.random.uniform(kcw, (H, Fout, Fin, KSIZE), minval=-bc, maxval=bc,
                                  dtype=jnp.float32)
    cw = jnp.transpose(cw_torch, (0, 3, 2, 1))               # (H, 5, Fin, Fout)
    cb = jax.random.uniform(kcb, (H, 1, Fout), minval=-bc, maxval=bc, dtype=jnp.float32)

    params = dict(w=w, a1=a1, a2=a2, cw=cw, cb=cb)

    out = jax.block_until_ready(gat_multihead_forward(x, adj, params))
    ref = reference_forward(x, adj, params)

    assert out.shape == (B, N, H * Fout), out.shape
    err = float(jnp.max(jnp.abs(out - ref)))
    # tolerance absorbs the bf16 MXU attention-output matmul and the EUP
    # approximate reciprocal in the softmax normalisation (inference numerics).
    assert jnp.allclose(out, ref, atol=5e-2, rtol=5e-2), f"max abs err {err}"

    print("KERNEL_OK")
</pallas_src>

<mosaic_0001>
module attributes {stable_mosaic.version = 11 : i64} {
  func.func @_gat_fused_kernel(%arg0: i32, %arg1: i32, %arg2: memref<1x12x16xf32, #tpu.memory_space<vmem>>, %arg3: memref<1x8x8xf32, #tpu.memory_space<vmem>>, %arg4: memref<16x128xf32, #tpu.memory_space<vmem>>, %arg5: memref<128x2xf32, #tpu.memory_space<vmem>>, %arg6: memref<128x2xf32, #tpu.memory_space<vmem>>, %arg7: memref<5x16x128xf32, #tpu.memory_space<vmem>>, %arg8: memref<1x128xf32, #tpu.memory_space<vmem>>, %arg9: memref<1x8x128xf32, #tpu.memory_space<vmem>>) attributes {dimension_semantics = [#tpu.dimension_semantics<parallel>, #tpu.dimension_semantics<parallel>], iteration_bounds = array<i64: 2, 1>, scalar_prefetch = 0 : i64, scratch_operands = 0 : i64, tpu.core_type = #tpu.core_type<tc>, window_params = [{transform_indices = @transform_0, window_bounds = array<i64: 1, 12, 16>}, {transform_indices = @transform_1, window_bounds = array<i64: 1, 8, 8>}, {pipeline_mode = #tpu.pipeline_mode<synchronous>, transform_indices = @transform_2, window_bounds = array<i64: 16, 128>}, {pipeline_mode = #tpu.pipeline_mode<synchronous>, transform_indices = @transform_3, window_bounds = array<i64: 128, 2>}, {pipeline_mode = #tpu.pipeline_mode<synchronous>, transform_indices = @transform_4, window_bounds = array<i64: 128, 2>}, {pipeline_mode = #tpu.pipeline_mode<synchronous>, transform_indices = @transform_5, window_bounds = array<i64: 5, 16, 128>}, {pipeline_mode = #tpu.pipeline_mode<synchronous>, transform_indices = @transform_6, window_bounds = array<i64: 1, 128>}, {transform_indices = @transform_7, window_bounds = array<i64: 1, 8, 128>}]} {
    %c8_i32 = arith.constant 8 : i32
    %0 = arith.muli %arg1, %c8_i32 : i32
    %1 = tpu.assume_multiple %0, 8 : i32
    %c0 = arith.constant 0 : index
    %c0_0 = arith.constant 0 : index
    %2 = vector.load %arg4[%c0, %c0_0] : memref<16x128xf32, #tpu.memory_space<vmem>>, vector<16x128xf32>
    %c0_1 = arith.constant 0 : index
    %c0_2 = arith.constant 0 : index
    %c0_3 = arith.constant 0 : index
    %3 = vector.load %arg3[%c0_1, %c0_2, %c0_3] : memref<1x8x8xf32, #tpu.memory_space<vmem>>, vector<1x8x8xf32>
    %4 = vector.shape_cast %3 : vector<1x8x8xf32> to vector<8x8xf32>
    %cst = arith.constant 0.000000e+00 : f32
    %5 = vector.broadcast %cst : f32 to vector<8x8xf32>
    %6 = arith.cmpf ogt, %4, %5 : vector<8x8xf32>
    %c0_4 = arith.constant 0 : index
    %c2 = arith.constant 2 : index
    %c0_5 = arith.constant 0 : index
    %7 = vector.load %arg2[%c0_4, %c2, %c0_5] : memref<1x12x16xf32, #tpu.memory_space<vmem>>, vector<1x8x16xf32>
    %8 = vector.shape_cast %7 : vector<1x8x16xf32> to vector<8x16xf32>
    %cst_6 = arith.constant dense<0.000000e+00> : vector<8x128xf32>
    %9 = tpu.matmul %8, %2, %cst_6 {dimension_numbers = #tpu.dot_dimension_numbers<[1], [0], [0], [1], [0, 0, 1, 1], [], []>} : vector<8x16xf32>, vector<16x128xf32>, vector<8x128xf32> -> vector<8x128xf32>
    %10 = arith.truncf %9 : vector<8x128xf32> to vector<8x128xbf16>
    %c0_7 = arith.constant 0 : index
    %c0_8 = arith.constant 0 : index
    %11 = vector.load %arg6[%c0_7, %c0_8] : memref<128x2xf32, #tpu.memory_space<vmem>>, vector<128x2xf32>
    %cst_9 = arith.constant dense<0.000000e+00> : vector<2x8xf32>
    %12 = tpu.matmul %11, %9, %cst_9 {dimension_numbers = #tpu.dot_dimension_numbers<[0], [1], [1], [0], [0, 1, 1, 0], [], []>} : vector<128x2xf32>, vector<8x128xf32>, vector<2x8xf32> -> vector<2x8xf32>
    %c2_i32 = arith.constant 2 : i32
    %13 = arith.addi %1, %c2_i32 : i32
    %c0_10 = arith.constant 0 : index
    %14 = arith.index_cast %13 : i32 to index
    %c0_11 = arith.constant 0 : index
    %15 = vector.load %arg2[%c0_10, %14, %c0_11] : memref<1x12x16xf32, #tpu.memory_space<vmem>>, vector<1x8x16xf32>
    %16 = vector.shape_cast %15 : vector<1x8x16xf32> to vector<8x16xf32>
    %cst_12 = arith.constant dense<0.000000e+00> : vector<8x128xf32>
    %17 = tpu.matmul %16, %2, %cst_12 {dimension_numbers = #tpu.dot_dimension_numbers<[1], [0], [0], [1], [0, 0, 1, 1], [], []>} : vector<8x16xf32>, vector<16x128xf32>, vector<8x128xf32> -> vector<8x128xf32>
    %c0_13 = arith.constant 0 : index
    %c0_14 = arith.constant 0 : index
    %18 = vector.load %arg5[%c0_13, %c0_14] : memref<128x2xf32, #tpu.memory_space<vmem>>, vector<128x2xf32>
    %cst_15 = arith.constant dense<0.000000e+00> : vector<8x2xf32>
    %19 = tpu.matmul %17, %18, %cst_15 {dimension_numbers = #tpu.dot_dimension_numbers<[1], [0], [0], [1], [0, 0, 1, 1], [], []>} : vector<8x128xf32>, vector<128x2xf32>, vector<8x2xf32> -> vector<8x2xf32>
    %c0_16 = arith.constant 0 : index
    %c0_17 = arith.constant 0 : index
    %20 = vector.load %arg8[%c0_16, %c0_17] : memref<1x128xf32, #tpu.memory_space<vmem>>, vector<1x128xf32>
    %c0_i32 = arith.constant 0 : i32
    %21 = arith.addi %1, %c0_i32 : i32
    %c0_18 = arith.constant 0 : index
    %22 = arith.index_cast %21 : i32 to index
    %c0_19 = arith.constant 0 : index
    %23 = vector.load %arg2[%c0_18, %22, %c0_19] : memref<1x12x16xf32, #tpu.memory_space<vmem>>, vector<1x8x16xf32>
    %24 = vector.shape_cast %23 : vector<1x8x16xf32> to vector<8x16xf32>
    %c0_20 = arith.constant 0 : index
    %c0_21 = arith.constant 0 : index
    %c0_22 = arith.constant 0 : index
    %25 = vector.load %arg7[%c0_20, %c0_21, %c0_22] : memref<5x16x128xf32, #tpu.memory_space<vmem>>, vector<1x16x128xf32>
    %26 = vector.shape_cast %25 : vector<1x16x128xf32> to vector<16x128xf32>
    %cst_23 = arith.constant dense<0.000000e+00> : vector<8x128xf32>
    %27 = tpu.matmul %24, %26, %cst_23 {dimension_numbers = #tpu.dot_dimension_numbers<[1], [0], [0], [1], [0, 0, 1, 1], [], []>} : vector<8x16xf32>, vector<16x128xf32>, vector<8x128xf32> -> vector<8x128xf32>
    %28 = vector.broadcast %20 : vector<1x128xf32> to vector<8x128xf32>
    %29 = arith.addf %28, %27 : vector<8x128xf32>
    %c1_i32 = arith.constant 1 : i32
    %30 = arith.addi %1, %c1_i32 : i32
    %c0_24 = arith.constant 0 : index
    %31 = arith.index_cast %30 : i32 to index
    %c0_25 = arith.constant 0 : index
    %32 = vector.load %arg2[%c0_24, %31, %c0_25] : memref<1x12x16xf32, #tpu.memory_space<vmem>>, vector<1x8x16xf32>
    %33 = vector.shape_cast %32 : vector<1x8x16xf32> to vector<8x16xf32>
    %c1 = arith.constant 1 : index
    %c0_26 = arith.constant 0 : index
    %c0_27 = arith.constant 0 : index
    %34 = vector.load %arg7[%c1, %c0_26, %c0_27] : memref<5x16x128xf32, #tpu.memory_space<vmem>>, vector<1x16x128xf32>
    %35 = vector.shape_cast %34 : vector<1x16x128xf32> to vector<16x128xf32>
    %cst_28 = arith.constant dense<0.000000e+00> : vector<8x128xf32>
    %36 = tpu.matmul %33, %35, %cst_28 {dimension_numbers = #tpu.dot_dimension_numbers<[1], [0], [0], [1], [0, 0, 1, 1], [], []>} : vector<8x16xf32>, vector<16x128xf32>, vector<8x128xf32> -> vector<8x128xf32>
    %37 = arith.addf %29, %36 : vector<8x128xf32>
    %c2_i32_29 = arith.constant 2 : i32
    %38 = arith.addi %1, %c2_i32_29 : i32
    %c0_30 = arith.constant 0 : index
    %39 = arith.index_cast %38 : i32 to index
    %c0_31 = arith.constant 0 : index
    %40 = vector.load %arg2[%c0_30, %39, %c0_31] : memref<1x12x16xf32, #tpu.memory_space<vmem>>, vector<1x8x16xf32>
    %41 = vector.shape_cast %40 : vector<1x8x16xf32> to vector<8x16xf32>
    %c2_32 = arith.constant 2 : index
    %c0_33 = arith.constant 0 : index
    %c0_34 = arith.constant 0 : index
    %42 = vector.load %arg7[%c2_32, %c0_33, %c0_34] : memref<5x16x128xf32, #tpu.memory_space<vmem>>, vector<1x16x128xf32>
    %43 = vector.shape_cast %42 : vector<1x16x128xf32> to vector<16x128xf32>
    %cst_35 = arith.constant dense<0.000000e+00> : vector<8x128xf32>
    %44 = tpu.matmul %41, %43, %cst_35 {dimension_numbers = #tpu.dot_dimension_numbers<[1], [0], [0], [1], [0, 0, 1, 1], [], []>} : vector<8x16xf32>, vector<16x128xf32>, vector<8x128xf32> -> vector<8x128xf32>
    %45 = arith.addf %37, %44 : vector<8x128xf32>
    %c3_i32 = arith.constant 3 : i32
    %46 = arith.addi %1, %c3_i32 : i32
    %c0_36 = arith.constant 0 : index
    %47 = arith.index_cast %46 : i32 to index
    %c0_37 = arith.constant 0 : index
    %48 = vector.load %arg2[%c0_36, %47, %c0_37] : memref<1x12x16xf32, #tpu.memory_space<vmem>>, vector<1x8x16xf32>
    %49 = vector.shape_cast %48 : vector<1x8x16xf32> to vector<8x16xf32>
    %c3 = arith.constant 3 : index
    %c0_38 = arith.constant 0 : index
    %c0_39 = arith.constant 0 : index
    %50 = vector.load %arg7[%c3, %c0_38, %c0_39] : memref<5x16x128xf32, #tpu.memory_space<vmem>>, vector<1x16x128xf32>
    %51 = vector.shape_cast %50 : vector<1x16x128xf32> to vector<16x128xf32>
    %cst_40 = arith.constant dense<0.000000e+00> : vector<8x128xf32>
    %52 = tpu.matmul %49, %51, %cst_40 {dimension_numbers = #tpu.dot_dimension_numbers<[1], [0], [0], [1], [0, 0, 1, 1], [], []>} : vector<8x16xf32>, vector<16x128xf32>, vector<8x128xf32> -> vector<8x128xf32>
    %53 = arith.addf %45, %52 : vector<8x128xf32>
    %c4_i32 = arith.constant 4 : i32
    %54 = arith.addi %1, %c4_i32 : i32
    %c0_41 = arith.constant 0 : index
    %55 = arith.index_cast %54 : i32 to index
    %c0_42 = arith.constant 0 : index
    %56 = vector.load %arg2[%c0_41, %55, %c0_42] : memref<1x12x16xf32, #tpu.memory_space<vmem>>, vector<1x8x16xf32>
    %57 = vector.shape_cast %56 : vector<1x8x16xf32> to vector<8x16xf32>
    %c4 = arith.constant 4 : index
    %c0_43 = arith.constant 0 : index
    %c0_44 = arith.constant 0 : index
    %58 = vector.load %arg7[%c4, %c0_43, %c0_44] : memref<5x16x128xf32, #tpu.memory_space<vmem>>, vector<1x16x128xf32>
    %59 = vector.shape_cast %58 : vector<1x16x128xf32> to vector<16x128xf32>
    %cst_45 = arith.constant dense<0.000000e+00> : vector<8x128xf32>
    %60 = tpu.matmul %57, %59, %cst_45 {dimension_numbers = #tpu.dot_dimension_numbers<[1], [0], [0], [1], [0, 0, 1, 1], [], []>} : vector<8x16xf32>, vector<16x128xf32>, vector<8x128xf32> -> vector<8x128xf32>
    %61 = arith.addf %53, %60 : vector<8x128xf32>
    %62 = vector.extract_strided_slice %19 {offsets = [0, 0], sizes = [8, 1], strides = [1, 1]} : vector<8x2xf32> to vector<8x1xf32>
    %63 = vector.extract_strided_slice %12 {offsets = [0, 0], sizes = [1, 8], strides = [1, 1]} : vector<2x8xf32> to vector<1x8xf32>
    %64 = vector.broadcast %62 : vector<8x1xf32> to vector<8x8xf32>
    %65 = vector.broadcast %63 : vector<1x8xf32> to vector<8x8xf32>
    %66 = arith.addf %64, %65 : vector<8x8xf32>
    %cst_46 = arith.constant 0.000000e+00 : f32
    %67 = vector.broadcast %cst_46 : f32 to vector<8x8xf32>
    %68 = arith.cmpf ogt, %66, %67 : vector<8x8xf32>
    %cst_47 = arith.constant 2.000000e-01 : f32
    %69 = vector.broadcast %cst_47 : f32 to vector<8x8xf32>
    %70 = arith.mulf %69, %66 : vector<8x8xf32>
    %71 = arith.select %68, %66, %70 : vector<8x8xi1>, vector<8x8xf32>
    %cst_48 = arith.constant -9.000000e+15 : f32
    %72 = vector.broadcast %cst_48 : f32 to vector<8x8xf32>
    %73 = arith.select %6, %71, %72 : vector<8x8xi1>, vector<8x8xf32>
    %cst_49 = arith.constant dense<0xFF800000> : vector<8xf32>
    %74 = vector.multi_reduction <maximumf>, %73, %cst_49 [1] : vector<8x8xf32> to vector<8xf32>
    %75 = vector.shape_cast %74 : vector<8xf32> to vector<8x1xf32>
    %76 = vector.broadcast %75 : vector<8x1xf32> to vector<8x8xf32>
    %77 = arith.subf %73, %76 : vector<8x8xf32>
    %78 = math.exp %77 : vector<8x8xf32>
    %cst_50 = arith.constant dense<0.000000e+00> : vector<8xf32>
    %79 = vector.multi_reduction <add>, %78, %cst_50 [1] : vector<8x8xf32> to vector<8xf32>
    %80 = vector.shape_cast %79 : vector<8xf32> to vector<8x1xf32>
    %81 = tpu.reciprocal %80 {approx = true} : vector<8x1xf32> -> vector<8x1xf32>
    %82 = arith.truncf %78 : vector<8x8xf32> to vector<8x8xbf16>
    %83 = vector.extract_strided_slice %10 {offsets = [0, 0], sizes = [8, 32], strides = [1, 1]} : vector<8x128xbf16> to vector<8x32xbf16>
    %cst_51 = arith.constant dense<0.000000e+00> : vector<8x32xf32>
    %84 = tpu.matmul %82, %83, %cst_51 {dimension_numbers = #tpu.dot_dimension_numbers<[1], [0], [0], [1], [0, 0, 1, 1], [], []>} : vector<8x8xbf16>, vector<8x32xbf16>, vector<8x32xf32> -> vector<8x32xf32>
    %85 = vector.broadcast %81 : vector<8x1xf32> to vector<8x32xf32>
    %86 = arith.mulf %84, %85 : vector<8x32xf32>
    %cst_52 = arith.constant 0.000000e+00 : f32
    %87 = vector.broadcast %cst_52 : f32 to vector<8x32xf32>
    %88 = arith.minimumf %86, %87 : vector<8x32xf32>
    %89 = math.exp %88 : vector<8x32xf32>
    %cst_53 = arith.constant 1.000000e+00 : f32
    %90 = vector.broadcast %cst_53 : f32 to vector<8x32xf32>
    %91 = arith.subf %89, %90 : vector<8x32xf32>
    %cst_54 = arith.constant 0.000000e+00 : f32
    %92 = vector.broadcast %cst_54 : f32 to vector<8x32xf32>
    %93 = arith.cmpf ogt, %86, %92 : vector<8x32xf32>
    %94 = arith.select %93, %86, %91 : vector<8x32xi1>, vector<8x32xf32>
    %95 = vector.extract_strided_slice %61 {offsets = [0, 0], sizes = [8, 32], strides = [1, 1]} : vector<8x128xf32> to vector<8x32xf32>
    %96 = arith.addf %94, %95 : vector<8x32xf32>
    %c0_55 = arith.constant 0 : index
    %c0_56 = arith.constant 0 : index
    %c0_57 = arith.constant 0 : index
    %97 = vector.load %arg9[%c0_55, %c0_56, %c0_57] : memref<1x8x128xf32, #tpu.memory_space<vmem>>, vector<1x8x32xf32>
    %98 = vector.shape_cast %97 : vector<1x8x32xf32> to vector<8x32xf32>
    %99 = vector.shape_cast %96 : vector<8x32xf32> to vector<1x8x32xf32>
    tpu.vector_store %arg9[%c0_55, %c0_56, %c0_57], %99 {strides = array<i32>} : memref<1x8x128xf32, #tpu.memory_space<vmem>>, vector<1x8x32xf32>,
    %100 = vector.extract_strided_slice %19 {offsets = [0, 1], sizes = [8, 1], strides = [1, 1]} : vector<8x2xf32> to vector<8x1xf32>
    %101 = vector.extract_strided_slice %12 {offsets = [1, 0], sizes = [1, 8], strides = [1, 1]} : vector<2x8xf32> to vector<1x8xf32>
    %102 = vector.broadcast %100 : vector<8x1xf32> to vector<8x8xf32>
    %103 = vector.broadcast %101 : vector<1x8xf32> to vector<8x8xf32>
    %104 = arith.addf %102, %103 : vector<8x8xf32>
    %cst_58 = arith.constant 0.000000e+00 : f32
    %105 = vector.broadcast %cst_58 : f32 to vector<8x8xf32>
    %106 = arith.cmpf ogt, %104, %105 : vector<8x8xf32>
    %cst_59 = arith.constant 2.000000e-01 : f32
    %107 = vector.broadcast %cst_59 : f32 to vector<8x8xf32>
    %108 = arith.mulf %107, %104 : vector<8x8xf32>
    %109 = arith.select %106, %104, %108 : vector<8x8xi1>, vector<8x8xf32>
    %cst_60 = arith.constant -9.000000e+15 : f32
    %110 = vector.broadcast %cst_60 : f32 to vector<8x8xf32>
    %111 = arith.select %6, %109, %110 : vector<8x8xi1>, vector<8x8xf32>
    %cst_61 = arith.constant dense<0xFF800000> : vector<8xf32>
    %112 = vector.multi_reduction <maximumf>, %111, %cst_61 [1] : vector<8x8xf32> to vector<8xf32>
    %113 = vector.shape_cast %112 : vector<8xf32> to vector<8x1xf32>
    %114 = vector.broadcast %113 : vector<8x1xf32> to vector<8x8xf32>
    %115 = arith.subf %111, %114 : vector<8x8xf32>
    %116 = math.exp %115 : vector<8x8xf32>
    %cst_62 = arith.constant dense<0.000000e+00> : vector<8xf32>
    %117 = vector.multi_reduction <add>, %116, %cst_62 [1] : vector<8x8xf32> to vector<8xf32>
    %118 = vector.shape_cast %117 : vector<8xf32> to vector<8x1xf32>
    %119 = tpu.reciprocal %118 {approx = true} : vector<8x1xf32> -> vector<8x1xf32>
    %120 = arith.truncf %116 : vector<8x8xf32> to vector<8x8xbf16>
    %121 = vector.extract_strided_slice %10 {offsets = [0, 32], sizes = [8, 32], strides = [1, 1]} : vector<8x128xbf16> to vector<8x32xbf16>
    %cst_63 = arith.constant dense<0.000000e+00> : vector<8x32xf32>
    %122 = tpu.matmul %120, %121, %cst_63 {dimension_numbers = #tpu.dot_dimension_numbers<[1], [0], [0], [1], [0, 0, 1, 1], [], []>} : vector<8x8xbf16>, vector<8x32xbf16>, vector<8x32xf32> -> vector<8x32xf32>
    %123 = vector.broadcast %119 : vector<8x1xf32> to vector<8x32xf32>
    %124 = arith.mulf %122, %123 : vector<8x32xf32>
    %cst_64 = arith.constant 0.000000e+00 : f32
    %125 = vector.broadcast %cst_64 : f32 to vector<8x32xf32>
    %126 = arith.minimumf %124, %125 : vector<8x32xf32>
    %127 = math.exp %126 : vector<8x32xf32>
    %cst_65 = arith.constant 1.000000e+00 : f32
    %128 = vector.broadcast %cst_65 : f32 to vector<8x32xf32>
    %129 = arith.subf %127, %128 : vector<8x32xf32>
    %cst_66 = arith.constant 0.000000e+00 : f32
    %130 = vector.broadcast %cst_66 : f32 to vector<8x32xf32>
    %131 = arith.cmpf ogt, %124, %130 : vector<8x32xf32>
    %132 = arith.select %131, %124, %129 : vector<8x32xi1>, vector<8x32xf32>
    %133 = vector.extract_strided_slice %61 {offsets = [0, 32], sizes = [8, 32], strides = [1, 1]} : vector<8x128xf32> to vector<8x32xf32>
    %134 = arith.addf %132, %133 : vector<8x32xf32>
    %c0_67 = arith.constant 0 : index
    %c0_68 = arith.constant 0 : index
    %c32 = arith.constant 32 : index
    %135 = vector.load %arg9[%c0_67, %c0_68, %c32] : memref<1x8x128xf32, #tpu.memory_space<vmem>>, vector<1x8x32xf32>
    %136 = vector.shape_cast %135 : vector<1x8x32xf32> to vector<8x32xf32>
    %137 = vector.shape_cast %134 : vector<8x32xf32> to vector<1x8x32xf32>
    tpu.vector_store %arg9[%c0_67, %c0_68, %c32], %137 {strides = array<i32>} : memref<1x8x128xf32, #tpu.memory_space<vmem>>, vector<1x8x32xf32>,
    %cst_69 = arith.constant 0.000000e+00 : f32
    %138 = vector.broadcast %cst_69 : f32 to vector<8x64xf32>
    %c0_70 = arith.constant 0 : index
    %c0_71 = arith.constant 0 : index
    %c64 = arith.constant 64 : index
    %139 = vector.load %arg9[%c0_70, %c0_71, %c64] : memref<1x8x128xf32, #tpu.memory_space<vmem>>, vector<1x8x64xf32>
    %140 = vector.shape_cast %139 : vector<1x8x64xf32> to vector<8x64xf32>
    %141 = vector.shape_cast %138 : vector<8x64xf32> to vector<1x8x64xf32>
    tpu.vector_store %arg9[%c0_70, %c0_71, %c64], %141 {strides = array<i32>} : memref<1x8x128xf32, #tpu.memory_space<vmem>>, vector<1x8x64xf32>,
    return
  }
  func.func @transform_0(%arg0: i32, %arg1: i32) -> (i32, i32, i32) {
    %c0_i32 = arith.constant 0 : i32
    %c0_i32_0 = arith.constant 0 : i32
    %c0_i32_1 = arith.constant 0 : i32
    return %arg0, %c0_i32, %c0_i32_0 : i32, i32, i32
  }
  func.func @transform_1(%arg0: i32, %arg1: i32) -> (i32, i32, i32) {
    %c0_i32 = arith.constant 0 : i32
    %c0_i32_0 = arith.constant 0 : i32
    return %arg0, %arg1, %c0_i32 : i32, i32, i32
  }
  func.func @transform_2(%arg0: i32, %arg1: i32) -> (i32, i32) {
    %c0_i32 = arith.constant 0 : i32
    %c0_i32_0 = arith.constant 0 : i32
    %c0_i32_1 = arith.constant 0 : i32
    return %c0_i32, %c0_i32_0 : i32, i32
  }
  func.func @transform_3(%arg0: i32, %arg1: i32) -> (i32, i32) {
    %c0_i32 = arith.constant 0 : i32
    %c0_i32_0 = arith.constant 0 : i32
    %c0_i32_1 = arith.constant 0 : i32
    return %c0_i32, %c0_i32_0 : i32, i32
  }
  func.func @transform_4(%arg0: i32, %arg1: i32) -> (i32, i32) {
    %c0_i32 = arith.constant 0 : i32
    %c0_i32_0 = arith.constant 0 : i32
    %c0_i32_1 = arith.constant 0 : i32
    return %c0_i32, %c0_i32_0 : i32, i32
  }
  func.func @transform_5(%arg0: i32, %arg1: i32) -> (i32, i32, i32) {
    %c0_i32 = arith.constant 0 : i32
    %c0_i32_0 = arith.constant 0 : i32
    %c0_i32_1 = arith.constant 0 : i32
    %c0_i32_2 = arith.constant 0 : i32
    return %c0_i32, %c0_i32_0, %c0_i32_1 : i32, i32, i32
  }
  func.func @transform_6(%arg0: i32, %arg1: i32) -> (i32, i32) {
    %c0_i32 = arith.constant 0 : i32
    %c0_i32_0 = arith.constant 0 : i32
    %c0_i32_1 = arith.constant 0 : i32
    return %c0_i32, %c0_i32_0 : i32, i32
  }
  func.func @transform_7(%arg0: i32, %arg1: i32) -> (i32, i32, i32) {
    %c0_i32 = arith.constant 0 : i32
    %c0_i32_0 = arith.constant 0 : i32
    return %arg0, %arg1, %c0_i32 : i32, i32, i32
  }
}

</mosaic_0001>

<bundles_post_ra>
// kernel: tpu_custom_call.1
= control target key start
LH: loop header
LB: loop body
LE: loop exit
PB: predicated region body
PF: predicated region fallthrough
CT: control target
= control target key end

     0   :  { %12 = vsyncpa [#allocation3], 0  ;;  %s2085_s0 = inlined_call_operand.vmem [shape: f32[2,12,16], index: 0, kind: input, shape index: {}]   ;;  %s2086_s1 = inlined_call_operand.vmem [shape: f32[2,8,8], index: 1, kind: input, shape index: {}]   ;;  %s2087_s2 = inlined_call_operand.vmem [shape: f32[16,128], index: 2, kind: input, shape index: {}]   ;;  %s2088_s3 = inlined_call_operand.vmem [shape: f32[128,2], index: 3, kind: input, shape index: {}]   ;;  %s2089_s4 = inlined_call_operand.vmem [shape: f32[128,2], index: 4, kind: input, shape index: {}]   ;;  %s2090_s5 = inlined_call_operand.vmem [shape: f32[5,16,128], index: 5, kind: input, shape index: {}]   ;;  %s2091_s6 = inlined_call_operand.vmem [shape: f32[1,128], index: 6, kind: input, shape index: {}]   ;;  %s2092_s7 = inlined_call_operand.hbm [shape: f32[2,8,128], index: 7, kind: output, shape index: {}]  }
   0x1   :  { %14 = vsyncpa [#allocation3 + $0x1], 0  ;;  %s1752_s24 = smov 0   ;;  %s1754_s25 = smov 0  }
   0x2   :  { %s1756_s26 = smov 0   ;;  %s1758_s27 = smov 0  }
   0x3   :  { %s1760_s28 = smov 0   ;;  %s1762_s29 = smov 0  }
   0x4 LB: > { %s1368_s30 = sadd.s32 4294967295, %s1703_s29   ;;  %s1369_s8 = sadd.s32 4294967294, %s1703_s29   ;;  %s1703_s29 = sphi %s1762_s29, %s20_s29   ;;  %s1699_s28 = sphi %s1760_s28, %s2099_s28   ;;  %s1695_s27 = sphi %s1758_s27, %s2098_s27   ;;  %s1691_s26 = sphi %s1756_s26, %s2097_s26   ;;  %s1687_s25 = sphi %s1754_s25, %s2096_s25   ;;  %s1683_s24 = sphi %s1752_s24, %s2095_s24  }
   0x5   : > { %s32_s9 = sadd.s32 1, %s1699_s28  ;;  %s200_s10 = sadd.s32 1, %s1691_s26 }
   0x6   : > { %p34_p0 = scmp.ge.s32.totalorder %s32_s9, 2  ;;  %p210_p1 = scmp.ne.s32.totalorder %s1691_s26, %s1687_s25 }
   0x7   : > { %p211_p2 = scmp.eq.s32.totalorder %s1368_s30, 1  ;;  %p216_p3 = scmp.ne.s32.totalorder %s1687_s25, %s1683_s24 }
   0x8   : > { %s2101_s9 = smov (%p34_p0, %s32_s9), 0  ;;  %p217_p5 = scmp.eq.s32.totalorder %s1369_s8, 1 }
   0x9   : > { %p1792_p4 = por %p211_p2, %p210_p1  ;;  %s195_s12 = ssub.s32 %s1699_s28, %s2101_s9 }
   0xa   : > { %p1372_p6 = scmp.ge.s32.totalorder %s1703_s29, 1  ;;  %p198_p7 = scmp.eq.s32.totalorder %s195_s12, 0 }
   0xb   : > { %p1799_p8 = por %p217_p5, %p216_p3  ;;  %p268_p9 = scmp.lt.s32.totalorder %s1703_s29, 3 }
   0xc   : > { %s1805_s14 = scalar_select %p198_p7, %s1691_s26, %s200_s10  }
   0xd   : > { %p269_p10 = pnand %p1372_p6, %p268_p9 }
   0xe   : > { %p307_p11 = scmp.lt.s32.totalorder (!%p269_p10), %s1695_s27, 1  ;;  %s1710_s30 = smov (!%p269_p10), 32  }
   0xf   : > { %272 = sbr.rel (%p269_p10) target bundleno = 1092 (0x444), region = 48  ;;  %s1402_s10 = sshll.u32 (!%p269_p10), %s1695_s27, 7 }
  0x14   : > { %v322_v0 = vld [vmem:[%s2087_s2 + $0x8] sm:$0xff]  ;;  %v1705_v1 = vmov 0.0   ;;  %v321_v2 = vld [vmem:[%s2087_s2] sm:$0xff]  ;;  %vm1706_vm0 = vmmov 0   ;;  %s1818_s19 = scalar_select %p307_p11, %s1695_s27, 1  ;;  %vm326_vm1 = vcmask 130048  }
  0x15   : > { %1450 = vmatprep.subr.mxu1 %v1705_v1  ;;  %1454 = vmatprep.mubr.msk.f32.mxu1 %vm1706_vm0, %v1705_v1  ;;  %v401_v3 = vld [vmem:[%s2089_s4] sm:$0xff]  ;;  %v685_v5 = vld [vmem:[%s2090_s5 + $0x8] sm:$0xff]  ;;  %v1384_v9 = vld [vmem:[%s2090_s5 + $0x18] sm:$0xff]  ;;  %vm1109_vm2 = vcmask 1043456   ;;  %v1707_v57 = vmov 0   ;;  %v1708_v58 = vmov 1  }
  0x16   : > { %1451 = vmatpush3.msra.mxu1 %v322_v0  ;;  %1462 = vmatprep.subr.mxu0 %v1705_v1  ;;  %s1405_s22 = sshll.u32 %s1818_s19, 4  ;;  %v402_v6 = vld [vmem:[%s2089_s4 + $0x8] sm:$0xff]  ;;  %v684_v7 = vld [vmem:[%s2090_s5] sm:$0xff]  ;;  %v403_v10 = vld [vmem:[%s2089_s4 + $0x10] sm:$0xff]  ;;  %s1376_s17 = sshll.u32 %s1818_s19, 3  ;;  %vm1094_vm5 = vcmask 64512  }
  0x17   : > { %1452 = vmatprep.subr.mxu1 %v1705_v1  ;;  %1463 = vmatpush3.msra.mxu0 %v322_v0  ;;  %s1830_s8 = scalar_lea.vmem %s2085_s0, %s1405_s22  ;;  %v1383_v11 = vld [vmem:[%s2090_s5 + $0x10] sm:$0xff]  ;;  %v1387_v13 = vld [vmem:[%s2090_s5 + $0x28] sm:$0xff]  ;;  %v404_v14 = vld [vmem:[%s2089_s4 + $0x18] sm:$0xff]  ;;  %s318_s21 = scalar_lea.vmem %s2086_s1, %s1376_s17  ;;  %vm1161_vm8 = vcmask 261120   ;;  %vm1252_vm10 = vcmask 523520   ;;  %vm1254_vm11 = vcmask 1048064  }
  0x18   : > { %1453 = vmatpush3.msra.mxu1 %v321_v2  ;;  %1464 = vmatprep.subr.mxu0 %v1705_v1  ;;  %v325_v4 = vld [vmem:[%s1830_s8 + $0x2] sm:$0xff]  ;;  %v1391_v16 = vld [vmem:[%s2090_s5 + $0x38] sm:$0xff]  ;;  %v1390_v18 = vld [vmem:[%s2090_s5 + $0x30] sm:$0xff]  ;;  %s1709_s19 = smov 96   ;;  %s2044_s17 = scalar_lea.hbm %s2092_s7, %s1402_s10 }
  0x19   : > { %1465 = vmatpush3.msra.mxu0 %v321_v2  ;;  %1466 = vmatprep.mubr.msk.f32.mxu0 %vm1706_vm0, %v1705_v1  ;;  %v683_v8 = vld [vmem:[%s1830_s8] sm:$0xff]  ;;  %v406_v19 = vld [vmem:[%s2089_s4 + $0x28] sm:$0xff]  ;;  %v407_v20 = vld [vmem:[%s2089_s4 + $0x30] sm:$0xff]  ;;  %s1711_s27 = smov [#allocation2]  }
  0x1a   : > { %417 = vxpose.xlu0.b32.start [1/16] (narrow) %v401_v3, 8  ;;  %1504 = vmatprep.subr.mxu0 %v1705_v1  ;;  %v1382_v12 = vld [vmem:[%s1830_s8 + $0x1] sm:$0xff]  ;;  %v408_v21 = vld [vmem:[%s2089_s4 + $0x38] sm:$0xff]  ;;  %v411_v24 = vld [vmem:[%s2089_s4 + $0x50] sm:$0xff] }
  0x1b   : > { %1455 = vmatmul.mubr.msk.f32.vlgmr.msra.gmra.mxu1 %vm326_vm1, %v325_v4  ;;  %1467 = vmatmul.mubr.msk.f32.vlgmr.msra.gmra.mxu0 %vm326_vm1, %v325_v4  ;;  %v1386_v15 = vld [vmem:[%s2090_s5 + $0x20] sm:$0xff]  ;;  %v410_v23 = vld [vmem:[%s2089_s4 + $0x48] sm:$0xff]  ;;  %v412_v25 = vld [vmem:[%s2089_s4 + $0x58] sm:$0xff] }
  0x1c   : > { %1505 = vmatpush3.msra.mxu0 %v685_v5  ;;  %1508 = vmatprep.mubr.msk.f32.mxu0 %vm1706_vm0, %v1705_v1  ;;  %v405_v17 = vld [vmem:[%s2089_s4 + $0x20] sm:$0xff]  ;;  %v414_v27 = vld [vmem:[%s2089_s4 + $0x68] sm:$0xff]  ;;  %v415_v28 = vld [vmem:[%s2089_s4 + $0x70] sm:$0xff] }
  0x1d   : > { %1506 = vmatprep.subr.mxu0 %v1705_v1  ;;  %1457 = vmatprep.subr.mxu1 %v1705_v1  ;;  %v409_v22 = vld [vmem:[%s2089_s4 + $0x40] sm:$0xff]  ;;  %v416_v29 = vld [vmem:[%s2089_s4 + $0x78] sm:$0xff]  ;;  %v1395_v31 = vld [vmem:[%s2090_s5 + $0x48] sm:$0xff] }
  0x1e   : > { %418 = vxpose.xlu0.b32.cont [2/16] (narrow) %v402_v6, 8  ;;  %1507 = vmatpush3.msra.mxu0 %v684_v7  ;;  %v413_v26 = vld [vmem:[%s2089_s4 + $0x60] sm:$0xff]  ;;  %v610_v39 = vld [vmem:[%s2088_s3 + $0x78] sm:$0xff]  ;;  %v609_v42 = vld [vmem:[%s2088_s3 + $0x70] sm:$0xff] }
  0x1f   : > { %1511 = vmatprep.subr.mxu0 %v1705_v1  ;;  %1509 = vmatmul.mubr.msk.f32.vlgmr.msra.gmra.mxu0 %vm326_vm1, %v683_v8  ;;  %v1389_v30 = vld [vmem:[%s1830_s8 + $0x3] sm:$0xff]  ;;  %v606_v45 = vld [vmem:[%s2088_s3 + $0x58] sm:$0xff]  ;;  %v605_v46 = vld [vmem:[%s2088_s3 + $0x50] sm:$0xff] }
  0x20   : > { %1512 = vmatpush3.msra.mxu0 %v1384_v9  ;;  %1515 = vmatprep.mubr.msk.f32.mxu0 %vm1706_vm0, %v1705_v1  ;;  %v1394_v32 = vld [vmem:[%s2090_s5 + $0x40] sm:$0xff]  ;;  %v608_v43 = vld [vmem:[%s2088_s3 + $0x68] sm:$0xff]  ;;  %v602_v49 = vld [vmem:[%s2088_s3 + $0x38] sm:$0xff] }
  0x21   : > { %1513 = vmatprep.subr.mxu0 %v1705_v1  ;;  %1459 = vmatprep.mubr.msk.f32.mxu1 %vm1706_vm0, %v1705_v1  ;;  %v1393_v33 = vld [vmem:[%s1830_s8 + $0x4] sm:$0xff]  ;;  %v601_v50 = vld [vmem:[%s2088_s3 + $0x30] sm:$0xff]  ;;  %v598_v53 = vld [vmem:[%s2088_s3 + $0x18] sm:$0xff]  ;;  %s304_s8 = sand.u32 1, %s1687_s25  }
  0x22   : > { %419 = vxpose.xlu0.b32.cont [3/16] (narrow) %v403_v10, 8  ;;  %1514 = vmatpush3.msra.mxu0 %v1383_v11  ;;  %v607_v44 = vld [vmem:[%s2088_s3 + $0x60] sm:$0xff]  ;;  %v604_v47 = vld [vmem:[%s2088_s3 + $0x48] sm:$0xff]  ;;  %v597_v54 = vld [vmem:[%s2088_s3 + $0x10] sm:$0xff]  ;;  %s1373_s22 = sshll.u32 %s304_s8, 3  ;;  %s1257_s18 = scalar_lea.sflag [#allocation3], %s304_s8 }
  0x23   : > { %1518 = vmatprep.subr.mxu0 %v1705_v1  ;;  %1516 = vmatmul.mubr.msk.f32.vlgmr.msra.gmra.mxu0 %vm326_vm1, %v1382_v12  ;;  %v603_v48 = vld [vmem:[%s2088_s3 + $0x40] sm:$0xff]  ;;  %v600_v51 = vld [vmem:[%s2088_s3 + $0x28] sm:$0xff]  ;;  %s306_s23 = scalar_lea.vmem [#allocation2], %s1373_s22 }
  0x24   : > { %1519 = vmatpush3.msra.mxu0 %v1387_v13  ;;  %1522 = vmatprep.mubr.msk.f32.mxu0 %vm1706_vm0, %v1705_v1  ;;  %v599_v52 = vld [vmem:[%s2088_s3 + $0x20] sm:$0xff]  ;;  %v596_v55 = vld [vmem:[%s2088_s3 + $0x8] sm:$0xff]  ;;  %s1271_s12 = sshll.u32 %s306_s23, 4  ;;  %s1272_s12 = int_to_ptr.vmem [resolvable:$true] %s1271_s12 }
  0x25   : > { %1520 = vmatprep.subr.mxu0 %v1705_v1  ;;  %v595_v56 = vld [vmem:[%s2088_s3] sm:$0xff]  ;;  %1612 = vset.pattern.permute.xlu1 %v1707_v57  ;;  %s1627_s20 = scalar_lea.vmem %s1272_s12, 128 }
  0x26   : > { %420 = vxpose.xlu0.b32.cont [4/16] (narrow) %v404_v14, 8  ;;  %1521 = vmatpush3.msra.mxu0 %v1386_v15  ;;  %v1381_v63 = vld [vmem:[%s2091_s6] ss:$0 sm:$0xff]  ;;  %p1628_p12 = scmp.ne.s32.totalorder %s1272_s12, %s1627_s20 }
  0x27   : > { %1525 = vmatprep.subr.mxu0 %v1705_v1  ;;  %1523 = vmatmul.mubr.msk.f32.vlgmr.msra.gmra.mxu0 %vm326_vm1, %v325_v4 }
  0x28   : > { %1526 = vmatpush3.msra.mxu0 %v1391_v16  ;;  %1529 = vmatprep.mubr.msk.f32.mxu0 %vm1706_vm0, %v1705_v1  ;;  %v1085_v16 = vlaneseq  ;;  %p1629_p13 = pnand %p1628_p12, %p1792_p4 }
  0x29   : > { %1527 = vmatprep.subr.mxu0 %v1705_v1 }
  0x2a   : > { %421 = vxpose.xlu0.b32.cont [5/16] (narrow) %v405_v17, 8  ;;  %1528 = vmatpush3.msra.mxu0 %v1390_v18  ;;  %v1086_v17 = vshrl.u32 %v1085_v16, 7  ;;  %p1630_p0 = pneg %p1629_p13 }
  0x2b   : > { %1532 = vmatprep.subr.mxu0 %v1705_v1  ;;  %1530 = vmatmul.mubr.msk.f32.vlgmr.msra.gmra.mxu0 %vm326_vm1, %v1389_v30 }
  0x2c   : > { %1533 = vmatpush3.msra.mxu0 %v1395_v31  ;;  %1536 = vmatprep.mubr.msk.f32.mxu0 %vm1706_vm0, %v1705_v1  ;;  %v1087_v18 = vsub.s32 0, %v1086_v17 }
  0x2d   : > { %1534 = vmatprep.subr.mxu0 %v1705_v1 }
  0x2e   : > { %422 = vxpose.xlu0.b32.cont [6/16] (narrow) %v406_v19, 8  ;;  %1535 = vmatpush3.msra.mxu0 %v1394_v32 }
  0x2f   : > { %1539 = vmatprep.subr.bf16.mxu0 %v1705_v1  ;;  %1537 = vmatmul.mubr.msk.f32.vlgmr.msra.gmra.mxu0 %vm326_vm1, %v1393_v33 }
  0x30   : > { %1541 = vmatprep.mubr.msk.bf16.mxu0 %vm1706_vm0, %v1705_v1 }
  0x32   : > { %423 = vxpose.xlu0.b32.cont [7/16] (narrow) %v407_v20, 8  ;;  %v1169_v20 = vsub.s32 1, %v1086_v17 }
  0x36   : > { %424 = vxpose.xlu0.b32.cont [8/16] (narrow) %v408_v21, 8 }
  0x3a   : > { %425 = vxpose.xlu0.b32.cont [9/16] (narrow) %v409_v22, 8  ;;  %v323_v22 = vld [vmem:[%s318_s21] sm:$0xff]  ;;  %s1631_s21 = sshll.u32 %s1711_s27, 4  ;;  %s1632_s21 = int_to_ptr.vmem [resolvable:$false] %s1631_s21 }
  0x3b   : > { %vm324_vm3 = vcmp.gt.f32.partialorder %v323_v22, 0.0  ;;  %p1634_p1 = scmp.lt.s32.totalorder %s1272_s12, %s1632_s21 }
  0x3e   : > { %426 = vxpose.xlu0.b32.cont [10/16] (narrow) %v410_v23, 8 }
  0x42   : > { %427 = vxpose.xlu0.b32.cont [11/16] (narrow) %v411_v24, 8 }
  0x46   : > { %428 = vxpose.xlu0.b32.cont [12/16] (narrow) %v412_v25, 8 }
  0x4a   : > { %429 = vxpose.xlu0.b32.cont [13/16] (narrow) %v413_v26, 8 }
  0x4e   : > { %430 = vxpose.xlu0.b32.cont [14/16] (narrow) %v414_v27, 8 }
  0x52   : > { %431 = vxpose.xlu0.b32.cont [15/16] (narrow) %v415_v28, 8 }
  0x56   : > { %432 = vxpose.xlu0.b32.end [16/16] (narrow) %v416_v29, 8 }
  0x7f   : > { %1614 = vset.pattern.permute.xlu0 %v1708_v58 }
  0x96   : > { %v433_v37 = vpop.trf.xlu0 }
  0xdb   : > { %v396_v34 = vpop.f32.mrf.mxu1  ;;  %v591_v35 = vpop.f32.mrf.mxu0 }
  0xdc   : > { %v1947_v36 = vpack.c.bf16 %v396_v34, %v396_v34  ;;  %1458 = vmatpush3.xpose.msra.mxu1 %v396_v34 }
  0xdd   : > { %v1456_v38 = vpop.f32.mrf.mxu1  ;;  %1469 = vmatprep.subr.mxu1 %v1705_v1  ;;  %v1468_v40 = vpop.f32.mrf.mxu0 }
  0xde   : > { %v1111_v41 = vsel %vm1109_vm2, %v1947_v36, 0 }
  0xdf   : > { %1460 = vmatmul.mubr.f32.vlgmr.msra.gmra.mxu1 %v433_v37  ;;  %1540 = vmatpush3.bf16.msra.mxu0 %v1111_v41  ;;  %v755_v0 = vpop.f32.mrf.mxu0 }
  0xe0   : > { %1470 = vmatpush3.msra.mxu1 %v610_v39  ;;  %1501 = vmatprep.mubr.msk.f32.mxu1 %vm1706_vm0, %v1705_v1  ;;  %v765_v2 = vadd.f32 %v1381_v63, %v755_v0 }
  0xe1   : > { %1471 = vmatprep.subr.mxu1 %v1705_v1  ;;  %1545 = vmatprep.subr.bf16.mxu0 %v1705_v1  ;;  %v1510_v3 = vpop.f32.mrf.mxu0 }
  0xe2   : > { %1472 = vmatpush3.msra.mxu1 %v609_v42 }
  0xe3   : > { %1473 = vmatprep.subr.mxu1 %v1705_v1  ;;  %v841_v4 = vpop.f32.mrf.mxu0 }
  0xe4   : > { %1474 = vmatpush3.msra.mxu1 %v608_v43  ;;  %v845_v5 = vadd.f32 %v841_v4, %v765_v2 }
  0xe5   : > { %1475 = vmatprep.subr.mxu1 %v1705_v1  ;;  %v1517_v6 = vpop.f32.mrf.mxu0 }
  0xe6   : > { %1476 = vmatpush3.msra.mxu1 %v607_v44 }
  0xe7   : > { %1477 = vmatprep.subr.mxu1 %v1705_v1  ;;  %v915_v7 = vpop.f32.mrf.mxu0 }
  0xe8   : > { %1478 = vmatpush3.msra.mxu1 %v606_v45  ;;  %v919_v8 = vadd.f32 %v915_v7, %v845_v5 }
  0xe9   : > { %1479 = vmatprep.subr.mxu1 %v1705_v1  ;;  %v1524_v9 = vpop.f32.mrf.mxu0 }
  0xea   : > { %1480 = vmatpush3.msra.mxu1 %v605_v46 }
  0xeb   : > { %1481 = vmatprep.subr.mxu1 %v1705_v1  ;;  %v995_v10 = vpop.f32.mrf.mxu0 }
  0xec   : > { %1482 = vmatpush3.msra.mxu1 %v604_v47  ;;  %v999_v11 = vadd.f32 %v995_v10, %v919_v8 }
  0xed   : > { %1483 = vmatprep.subr.mxu1 %v1705_v1  ;;  %v1531_v12 = vpop.f32.mrf.mxu0 }
  0xee   : > { %1484 = vmatpush3.msra.mxu1 %v603_v48 }
  0xef   : > { %1485 = vmatprep.subr.mxu1 %v1705_v1  ;;  %v1075_v13 = vpop.f32.mrf.mxu0 }
  0xf0   : > { %1486 = vmatpush3.msra.mxu1 %v602_v49  ;;  %v2021_v14 = vadd.f32 %v1075_v13, %v999_v11 }
  0xf1   : > { %1487 = vmatprep.subr.mxu1 %v1705_v1  ;;  %v1538_v15 = vpop.f32.mrf.mxu0 }
  0xf2   : > { %1488 = vmatpush3.msra.mxu1 %v601_v50 }
  0xf3   : > { %1489 = vmatprep.subr.mxu1 %v1705_v1 }
  0xf4   : > { %1490 = vmatpush3.msra.mxu1 %v600_v51 }
  0xf5   : > { %1491 = vmatprep.subr.mxu1 %v1705_v1 }
  0xf6   : > { %1492 = vmatpush3.msra.mxu1 %v599_v52 }
  0xf7   : > { %1493 = vmatprep.subr.mxu1 %v1705_v1 }
  0xf8   : > { %1494 = vmatpush3.msra.mxu1 %v598_v53 }
  0xf9   : > { %1495 = vmatprep.subr.mxu1 %v1705_v1 }
  0xfa   : > { %1496 = vmatpush3.msra.mxu1 %v597_v54 }
  0xfb   : > { %1497 = vmatprep.subr.mxu1 %v1705_v1 }
  0xfc   : > { %1498 = vmatpush3.msra.mxu1 %v596_v55 }
  0xfd   : > { %1499 = vmatprep.subr.mxu1 %v1705_v1 }
  0xfe   : > { %1500 = vmatpush3.msra.mxu1 %v595_v56 }
  0xff   : > { %1502 = vmatmul.mubr.f32.vlgmr.msra.gmra.mxu1 %v591_v35 }
 0x19f   : > { %v515_v59 = vpop.f32.mrf.mxu1 }
 0x1a0   : > { %v1088_v19 = vrot.slane %v515_v59, %v1087_v18  ;;  %v1170_v25 = vrot.slane %v515_v59, %v1169_v20 }
 0x1a1   : > { %v1461_v60 = vpop.f32.mrf.mxu1 }
 0x1bf   : > { %v677_v61 = vpop.f32.mrf.mxu1 }
 0x1c0   : > { %1082 = vperm.xlu1 %1612, %v677_v61  }
 0x1c1   : > { %v1503_v62 = vpop.f32.mrf.mxu1 }
 0x1c4   : > { %1613 = vset.pattern.permute.xlu1 %v1708_v58 }
 0x1c5   : > { %1164 = vperm.xlu1 %1613, %v677_v61  }
 0x23b   : > { %v1083_v21 = vpop.permute.xlu1 %1082 }
 0x23c   : > { %v1089_v23 = vadd.f32 %v1088_v19, %v1083_v21 }
 0x23e   : > { %v1091_v24 = vmul.f32 0.2, %v1089_v23  ;;  %vm1090_vm4 = vcmp.gt.f32.partialorder %v1089_v23, 0.0 }
 0x240   : > { %v1165_v26 = vpop.permute.xlu1 %1164  ;;  %v1092_v27 = vsel %vm1090_vm4, %v1089_v23, %v1091_v24 }
 0x241   : > { %v1171_v28 = vadd.f32 %v1170_v25, %v1165_v26  ;;  %v1093_v29 = vsel %vm324_vm3, %v1092_v27, -9e+15 }
 0x242   : > { %v1095_v30 = vsel %vm1094_vm5, %v1093_v29, -inf }
 0x243   : > { %v1173_v31 = vmul.f32 0.2, %v1171_v28  ;;  %1096 = vmax.xlane.f32.xlu1 %v1095_v30  ;;  %vm1172_vm6 = vcmp.gt.f32.partialorder %v1171_v28, 0.0 }
 0x245   : > { %v1174_v32 = vsel %vm1172_vm6, %v1171_v28, %v1173_v31 }
 0x246   : > { %v1175_v33 = vsel %vm324_vm3, %v1174_v32, -9e+15 }
 0x247   : > { %v1176_v34 = vsel %vm1094_vm5, %v1175_v33, -inf }
 0x248   : > { %1177 = vmax.xlane.f32.xlu1 %v1176_v34 }
 0x259   : > { %1188 = vrot.lane.b32.xlu1 %v1947_v36, %s1709_s19 }
 0x25d   : > { %1244 = vrot.lane.b32.xlu1 %v2021_v14, %s1709_s19  ;;  %s1633_s19 = scalar_lea.vmem %s1632_s21, 256 }
 0x25e   : > { %p1635_p2 = scmp.lt.s32.totalorder %s1633_s19, %s1627_s20 }
 0x260   : > { %p1636_p3 = por %p1635_p2, %p1634_p1 }
 0x262   : > { %p1637_p5 = pnand %p1636_p3, %p1630_p0 }
 0x2cc   : > { %v1097_v35 = vpop.xlane.xlu1 %1096 }
 0x2cd   : > { %v1098_v37 = vsub.f32 %v1093_v29, %v1097_v35 }
 0x2cf   : > { %v1099_v38 = vmul.f32 1.442695, %v1098_v37 }
 0x2d1   : > { %1615 = vpow2.f32 %v1099_v38  ;;  %v1178_v39 = vpop.xlane.xlu1 %1177 }
 0x2d2   : > { %v1179_v40 = vsub.f32 %v1175_v33, %v1178_v39 }
 0x2d4   : > { %v1180_v41 = vmul.f32 1.442695, %v1179_v40 }
 0x2d5   : > { %v1189_v43 = vpop.permute.xlu1 %1188 }
 0x2d6   : > { %1617 = vpow2.f32 %v1180_v41  ;;  %v1194_v46 = vsel %vm1109_vm2, %v1189_v43, 0 }
 0x2d9   : > { %v1245_v49 = vpop.permute.xlu1 %1244 }
 0x2de   : > { %v1616_v42 = vpop.eup %1615 }
 0x2df   : > { %v1101_v44 = vsel %vm1094_vm5, %v1616_v42, 0.0  ;;  %v1105_v45 = vpack.c.bf16 %v1616_v42, %v1616_v42 }
 0x2e0   : > { %1102 = vadd.xlane.f32.xlu1 %v1101_v44 }
 0x2e1   : > { %1542 = vmatmul.mubr.msk.bf16.vlgmr.msra.gmra.mxu0 %vm1094_vm5, %v1105_v45 }
 0x2e2   : > { %1546 = vmatpush3.bf16.msra.mxu0 %v1194_v46  ;;  %1547 = vmatprep.mubr.msk.bf16.mxu0 %vm1706_vm0, %v1705_v1 }
 0x2e3   : > { %v1618_v36 = vpop.eup %1617 }
 0x2e4   : > { %v1182_v47 = vsel %vm1094_vm5, %v1618_v36, 0.0  ;;  %v1186_v48 = vpack.c.bf16 %v1618_v36, %v1618_v36 }
 0x2e5   : > { %1183 = vadd.xlane.f32.xlu0 %v1182_v47 }
 0x2e9   : > { %1548 = vmatmul.mubr.msk.bf16.vlgmr.msra.gmra.mxu0 %vm1094_vm5, %v1186_v48 }
 0x369   : > { %v1103_v50 = vpop.xlane.xlu1 %1102 }
 0x36a   : > { %1619 = vrcp.f32 %v1103_v50 }
 0x36e   : > { %v1184_v51 = vpop.xlane.xlu0 %1183 }
 0x36f   : > { %1621 = vrcp.f32 %v1184_v51 }
 0x377   : > { %v1620_v52 = vpop.eup %1619 }
 0x37c   : > { %v1622_v60 = vpop.eup %1621 }
 0x3a1   : > { %v1147_v53 = vpop.f32.mrf.mxu0 }
 0x3a2   : > { %v1153_v54 = vmul.f32 %v1620_v52, %v1147_v53 }
 0x3a3   : > { %v1543_v55 = vpop.f32.mrf.mxu0 }
 0x3a4   : > { %v1154_v56 = vmin.f32 %v1153_v54, 0.0  ;;  %vm1158_vm7 = vcmp.gt.f32.partialorder %v1153_v54, 0.0 }
 0x3a5   : > { %v1150_v57 = vpop.f32.mrf.mxu0 }
 0x3a6   : > { %v1155_v58 = vmul.f32 1.442695, %v1154_v56 }
 0x3a7   : > { %v1544_v59 = vpop.f32.mrf.mxu0 }
 0x3a8   : > { %1623 = vpow2.f32 %v1155_v58 }
 0x3a9   : > { %v1230_v61 = vpop.f32.mrf.mxu0 }
 0x3aa   : > { %v1236_v62 = vmul.f32 %v1622_v60, %v1230_v61 }
 0x3ab   : > { %v1549_v63 = vpop.f32.mrf.mxu0 }
 0x3ac   : > { %v1237_v0 = vmin.f32 %v1236_v62, 0.0  ;;  %vm1241_vm9 = vcmp.gt.f32.partialorder %v1236_v62, 0.0 }
 0x3ad   : > { %v1233_v2 = vpop.f32.mrf.mxu0 }
 0x3ae   : > { %v1238_v3 = vmul.f32 1.442695, %v1237_v0 }
 0x3af   : > { %v1550_v4 = vpop.f32.mrf.mxu0 }
 0x3b0   : > { %1625 = vpow2.f32 %v1238_v3 }
 0x3b5   : > { %v1624_v5 = vpop.eup %1623 }
 0x3b6   : > { %v1398_v6 = vadd.f32 -1.0, %v1624_v5 }
 0x3b8   : > { %v1159_v7 = vsel %vm1158_vm7, %v1153_v54, %v1398_v6 }
 0x3b9   : > { %v1160_v8 = vadd.f32 %v1159_v7, %v2021_v14 }
 0x3bb   : > { %1162 = vst.msk [vmem:[%s306_s23] sm:$0xff] %vm1161_vm8, %v1160_v8 }
 0x3bd   : > { %v1626_v9 = vpop.eup %1625 }
 0x3be   : > { %v1400_v10 = vadd.f32 -1.0, %v1626_v9 }
 0x3c0   : > { %v1242_v11 = vsel %vm1241_vm9, %v1236_v62, %v1400_v10 }
 0x3c1   : > { %v1247_v12 = vadd.f32 %v1245_v49, %v1242_v11 }
 0x3c3   : > { %1249 = vrot.lane.b32.xlu1 %v1247_v12, %s1710_s30 }
 0x435   : > { %v1250_v13 = vpop.permute.xlu1 %1249 }
 0x436   : > { %1253 = vst.msk [vmem:[%s306_s23] sm:$0xff] %vm1252_vm10, %v1250_v13 }
 0x437   : > { %1255 = vst.msk [vmem:[%s306_s23] sm:$0xff] %vm1254_vm11, %v1705_v1 }
 0x438   : > { %1640 = shalt.err (!%p1637_p5)
}
 0x439   : > { %s1641_s22 = scalar_lea.hbm %s2044_s17, 128  ;;  %s1645_s30 = scalar_lea.hbm %s2092_s7, 256 }
 0x43a   : > { %p1642_p6 = scmp.ne.s32.totalorder %s2044_s17, %s1641_s22  ;;  %p1646_p10 = scmp.lt.s32.totalorder %s2044_s17, %s2092_s7 }
 0x43b   : > { %p1647_p11 = scmp.lt.s32.totalorder %s1645_s30, %s1641_s22 }
 0x43c   : > { %p1643_p7 = pnand %p1642_p6, %p1792_p4 }
 0x43d   : > { %p1648_p12 = por %p1647_p11, %p1646_p10 }
 0x43e   : > { %p1644_p9 = pneg %p1643_p7 }
 0x440   : > { %p1649_p13 = pnand %p1648_p12, %p1644_p9 }
 0x442   : > { %1652 = shalt.err (!%p1649_p13)
}
 0x443   : > { %1551 = dma.vmem_to_hbm [thread:$0]  (%p1792_p4), %s1272_s12, 128, %s2044_s17, %s1257_s18  }
 0x444 PF: > { %p1557_p0 = scmp.ge.s32.totalorder %s1703_s29, 2  ;;  %s1283_s16 = sand.u32 1, %s1683_s24  }
 0x445   : > { %s1284_s20 = scalar_lea.sflag [#allocation3], %s1283_s16 }
 0x446   : > { %p1554_p1 = pnand %p1557_p0, %p1799_p8 }
 0x448   : > { %p1555_p2 = pneg %p1554_p1 }
 0x44a   : > { %1678 = dma.done.wait (%p1555_p2), %s1284_s20, 128  }
 0x44b   : > { %1680 = vsyncadd (%p1555_p2), %s1284_s20, 4294967168  ;;  %s20_s29 = sadd.s32 1, %s1703_s29   ;;  %s2095_s24 = smov %s1687_s25 }
 0x44c   : > { %p17_p3 = scmp.ge.s32.totalorder %s20_s29, 4   ;;  %s2096_s25 = smov %s1691_s26 }
 0x44d   : > { %s2097_s26 = smov %s1805_s14  ;;  %s2098_s27 = smov %s1699_s28 }
 0x44e   : > { %s2099_s28 = smov %s2101_s9  ;;  %19 = sbr.rel (!%p17_p3) target bundleno = 4 (0x4), region = 95 }
 0x453   :  { %1289 = vsyncpa [#allocation3], 1 }
 0x454   :  { %1291 = vsyncpa [#allocation3 + $0x1], 1 }

</bundles_post_ra>
